<compile_context>
chip_gen: v7x
topology: tpu7x:2x2x1
jax: 0.10.0
libtpu: 0.0.40
codegen_flags: <defaults>
</compile_context>

<pallas_src>
import jax
import jax.numpy as jnp
from jax.experimental import pallas as pl
from jax.experimental.pallas import tpu as pltpu


def _round_up(x, m):
    return ((x + m - 1) // m) * m


def dqn_kernel(x_ref, w1_ref, b1_ref, w2_ref, b2_ref, w3_ref, b3_ref, o_ref):
    # fc1 + relu  (f32 MXU matmul, f32 bias/ReLU on the VPU)
    h1 = jnp.dot(x_ref[...], w1_ref[...], preferred_element_type=jnp.float32)
    h1 = jnp.maximum(h1 + b1_ref[...], 0.0)
    # fc2 + relu
    h2 = jnp.dot(h1, w2_ref[...], preferred_element_type=jnp.float32)
    h2 = jnp.maximum(h2 + b2_ref[...], 0.0)
    # fc3 (no activation); narrow (TB, n_actions) store — kernel is DMA-bound, so
    # the masked store is free and the HBM writeback is only the useful bytes.
    out = jnp.dot(h2, w3_ref[...], preferred_element_type=jnp.float32)
    o_ref[...] = (out + b3_ref[...]).astype(o_ref.dtype)


def dqn_forward(x, params, max_batch_tile=4096):
    """x: (B, 10) float32; params: dict of (in,out) f32 weights / (1,out) f32 biases."""
    B, in_dim = x.shape
    h1_dim, h2_dim = params["w1"].shape[1], params["w2"].shape[1]
    n_actions = params["w3"].shape[1]

    # Batch tile: multiple of 8 (f32 sublane quantum); large enough to amortize
    # per-grid-step overhead, capped at ~ceil(B/2) so the parallel batch axis
    # still yields >=2 grid steps for v7x's two TensorCores (no-op on v5e/v6e).
    TB = min(max_batch_tile, max(8, _round_up(pl.cdiv(B, 2), 8)))
    grid = (pl.cdiv(B, TB),)

    n_param = sum(int(p.size) for p in params.values())
    cost = pl.CostEstimate(
        flops=2 * B * (in_dim * h1_dim + h1_dim * h2_dim + h2_dim * n_actions),
        transcendentals=0,
        bytes_accessed=4 * (B * in_dim + B * n_actions + n_param),
    )

    return pl.pallas_call(
        dqn_kernel,
        out_shape=jax.ShapeDtypeStruct((B, n_actions), jnp.float32),
        grid=grid,
        in_specs=[
            # x: tiled over batch (ragged last block handled by Pallas masking)
            pl.BlockSpec((TB, in_dim), lambda i: (i, 0)),
            # weights/biases: constant index_map -> loaded once, VMEM-resident
            pl.BlockSpec((in_dim, h1_dim), lambda i: (0, 0)),
            pl.BlockSpec((1, h1_dim), lambda i: (0, 0)),
            pl.BlockSpec((h1_dim, h2_dim), lambda i: (0, 0)),
            pl.BlockSpec((1, h2_dim), lambda i: (0, 0)),
            pl.BlockSpec((h2_dim, n_actions), lambda i: (0, 0)),
            pl.BlockSpec((1, n_actions), lambda i: (0, 0)),
        ],
        out_specs=pl.BlockSpec((TB, n_actions), lambda i: (i, 0)),
        compiler_params=pltpu.CompilerParams(
            dimension_semantics=("parallel",)),
        cost_estimate=cost,
    )(x, params["w1"], params["b1"], params["w2"], params["b2"],
      params["w3"], params["b3"])


def init_params(key, n_actions):
    """Deterministic init mirroring PyTorch nn.Linear default:
    U(-1/sqrt(fan_in), 1/sqrt(fan_in)) for both weight and bias."""
    dims = [(10, 128), (128, 64), (64, n_actions)]
    params = {}
    for i, (fan_in, fan_out) in enumerate(dims, start=1):
        key, kw, kb = jax.random.split(key, 3)
        bound = 1.0 / jnp.sqrt(float(fan_in))
        # stored as (in, out) == PyTorch weight (out, in) transposed
        params[f"w{i}"] = jax.random.uniform(
            kw, (fan_in, fan_out), jnp.float32, minval=-bound, maxval=bound
        )
        params[f"b{i}"] = jax.random.uniform(
            kb, (1, fan_out), jnp.float32, minval=-bound, maxval=bound
        )
    return params


def dqn_reference(x, params):
    """Pure-JAX f32 reference of the same forward pass."""
    h = jnp.maximum(x @ params["w1"] + params["b1"], 0.0)
    h = jnp.maximum(h @ params["w2"] + params["b2"], 0.0)
    return h @ params["w3"] + params["b3"]


if __name__ == "__main__":
    key = jax.random.PRNGKey(0)
    k_params, k_x1, k_x2 = jax.random.split(key, 3)

    n_actions = 4
    params = init_params(k_params, n_actions)

    # Case 1: small batch, single grid step, blocks exactly cover the arrays.
    x1 = jax.random.normal(k_x1, (8, 10), jnp.float32)
    out1 = jax.block_until_ready(dqn_forward(x1, params))
    ref1 = dqn_reference(x1, params)
    assert out1.shape == (8, n_actions)
    assert jnp.allclose(out1, ref1, atol=1e-2, rtol=1e-2), (
        float(jnp.max(jnp.abs(out1 - ref1)))
    )

    # Case 2: ragged batch -> 2 grid steps with a masked partial last block.
    x2 = jax.random.normal(k_x2, (20, 10), jnp.float32)
    out2 = jax.block_until_ready(dqn_forward(x2, params))
    ref2 = dqn_reference(x2, params)
    assert out2.shape == (20, n_actions)
    assert jnp.allclose(out2, ref2, atol=1e-2, rtol=1e-2), (
        float(jnp.max(jnp.abs(out2 - ref2)))
    )

    print("KERNEL_OK")
</pallas_src>

<mosaic_0001>
module attributes {stable_mosaic.version = 11 : i64} {
  func.func @dqn_kernel(%arg0: i32, %arg1: memref<8x10xf32, #tpu.memory_space<vmem>>, %arg2: memref<10x128xf32, #tpu.memory_space<vmem>>, %arg3: memref<1x128xf32, #tpu.memory_space<vmem>>, %arg4: memref<128x64xf32, #tpu.memory_space<vmem>>, %arg5: memref<1x64xf32, #tpu.memory_space<vmem>>, %arg6: memref<64x4xf32, #tpu.memory_space<vmem>>, %arg7: memref<1x4xf32, #tpu.memory_space<vmem>>, %arg8: memref<8x4xf32, #tpu.memory_space<vmem>>) attributes {dimension_semantics = [#tpu.dimension_semantics<parallel>], iteration_bounds = array<i64: 1>, scalar_prefetch = 0 : i64, scratch_operands = 0 : i64, tpu.core_type = #tpu.core_type<tc>, window_params = [{transform_indices = @transform_0, window_bounds = array<i64: 8, 10>}, {pipeline_mode = #tpu.pipeline_mode<synchronous>, transform_indices = @transform_1, window_bounds = array<i64: 10, 128>}, {pipeline_mode = #tpu.pipeline_mode<synchronous>, transform_indices = @transform_2, window_bounds = array<i64: 1, 128>}, {pipeline_mode = #tpu.pipeline_mode<synchronous>, transform_indices = @transform_3, window_bounds = array<i64: 128, 64>}, {pipeline_mode = #tpu.pipeline_mode<synchronous>, transform_indices = @transform_4, window_bounds = array<i64: 1, 64>}, {pipeline_mode = #tpu.pipeline_mode<synchronous>, transform_indices = @transform_5, window_bounds = array<i64: 64, 4>}, {pipeline_mode = #tpu.pipeline_mode<synchronous>, transform_indices = @transform_6, window_bounds = array<i64: 1, 4>}, {transform_indices = @transform_7, window_bounds = array<i64: 8, 4>}]} {
    %c0 = arith.constant 0 : index
    %c0_0 = arith.constant 0 : index
    %0 = vector.load %arg1[%c0, %c0_0] : memref<8x10xf32, #tpu.memory_space<vmem>>, vector<8x10xf32>
    %c0_1 = arith.constant 0 : index
    %c0_2 = arith.constant 0 : index
    %1 = vector.load %arg2[%c0_1, %c0_2] : memref<10x128xf32, #tpu.memory_space<vmem>>, vector<10x128xf32>
    %cst = arith.constant dense<0.000000e+00> : vector<8x128xf32>
    %2 = tpu.matmul %0, %1, %cst {dimension_numbers = #tpu.dot_dimension_numbers<[1], [0], [0], [1], [0, 0, 1, 1], [], []>} : vector<8x10xf32>, vector<10x128xf32>, vector<8x128xf32> -> vector<8x128xf32>
    %c0_3 = arith.constant 0 : index
    %c0_4 = arith.constant 0 : index
    %3 = vector.load %arg3[%c0_3, %c0_4] : memref<1x128xf32, #tpu.memory_space<vmem>>, vector<1x128xf32>
    %4 = vector.broadcast %3 : vector<1x128xf32> to vector<8x128xf32>
    %5 = arith.addf %2, %4 : vector<8x128xf32>
    %cst_5 = arith.constant 0.000000e+00 : f32
    %6 = vector.broadcast %cst_5 : f32 to vector<8x128xf32>
    %7 = arith.maximumf %5, %6 : vector<8x128xf32>
    %c0_6 = arith.constant 0 : index
    %c0_7 = arith.constant 0 : index
    %8 = vector.load %arg4[%c0_6, %c0_7] : memref<128x64xf32, #tpu.memory_space<vmem>>, vector<128x64xf32>
    %cst_8 = arith.constant dense<0.000000e+00> : vector<8x64xf32>
    %9 = tpu.matmul %7, %8, %cst_8 {dimension_numbers = #tpu.dot_dimension_numbers<[1], [0], [0], [1], [0, 0, 1, 1], [], []>} : vector<8x128xf32>, vector<128x64xf32>, vector<8x64xf32> -> vector<8x64xf32>
    %c0_9 = arith.constant 0 : index
    %c0_10 = arith.constant 0 : index
    %10 = vector.load %arg5[%c0_9, %c0_10] : memref<1x64xf32, #tpu.memory_space<vmem>>, vector<1x64xf32>
    %11 = vector.broadcast %10 : vector<1x64xf32> to vector<8x64xf32>
    %12 = arith.addf %9, %11 : vector<8x64xf32>
    %cst_11 = arith.constant 0.000000e+00 : f32
    %13 = vector.broadcast %cst_11 : f32 to vector<8x64xf32>
    %14 = arith.maximumf %12, %13 : vector<8x64xf32>
    %c0_12 = arith.constant 0 : index
    %c0_13 = arith.constant 0 : index
    %15 = vector.load %arg6[%c0_12, %c0_13] : memref<64x4xf32, #tpu.memory_space<vmem>>, vector<64x4xf32>
    %cst_14 = arith.constant dense<0.000000e+00> : vector<8x4xf32>
    %16 = tpu.matmul %14, %15, %cst_14 {dimension_numbers = #tpu.dot_dimension_numbers<[1], [0], [0], [1], [0, 0, 1, 1], [], []>} : vector<8x64xf32>, vector<64x4xf32>, vector<8x4xf32> -> vector<8x4xf32>
    %c0_15 = arith.constant 0 : index
    %c0_16 = arith.constant 0 : index
    %17 = vector.load %arg7[%c0_15, %c0_16] : memref<1x4xf32, #tpu.memory_space<vmem>>, vector<1x4xf32>
    %18 = vector.broadcast %17 : vector<1x4xf32> to vector<8x4xf32>
    %19 = arith.addf %16, %18 : vector<8x4xf32>
    %c0_17 = arith.constant 0 : index
    %c0_18 = arith.constant 0 : index
    %20 = vector.load %arg8[%c0_17, %c0_18] : memref<8x4xf32, #tpu.memory_space<vmem>>, vector<8x4xf32>
    tpu.vector_store %arg8[%c0_17, %c0_18], %19 {strides = array<i32>} : memref<8x4xf32, #tpu.memory_space<vmem>>, vector<8x4xf32>,
    return
  }
  func.func @transform_0(%arg0: i32) -> (i32, i32) {
    %c0_i32 = arith.constant 0 : i32
    %c0_i32_0 = arith.constant 0 : i32
    return %arg0, %c0_i32 : i32, i32
  }
  func.func @transform_1(%arg0: i32) -> (i32, i32) {
    %c0_i32 = arith.constant 0 : i32
    %c0_i32_0 = arith.constant 0 : i32
    %c0_i32_1 = arith.constant 0 : i32
    return %c0_i32, %c0_i32_0 : i32, i32
  }
  func.func @transform_2(%arg0: i32) -> (i32, i32) {
    %c0_i32 = arith.constant 0 : i32
    %c0_i32_0 = arith.constant 0 : i32
    %c0_i32_1 = arith.constant 0 : i32
    return %c0_i32, %c0_i32_0 : i32, i32
  }
  func.func @transform_3(%arg0: i32) -> (i32, i32) {
    %c0_i32 = arith.constant 0 : i32
    %c0_i32_0 = arith.constant 0 : i32
    %c0_i32_1 = arith.constant 0 : i32
    return %c0_i32, %c0_i32_0 : i32, i32
  }
  func.func @transform_4(%arg0: i32) -> (i32, i32) {
    %c0_i32 = arith.constant 0 : i32
    %c0_i32_0 = arith.constant 0 : i32
    %c0_i32_1 = arith.constant 0 : i32
    return %c0_i32, %c0_i32_0 : i32, i32
  }
  func.func @transform_5(%arg0: i32) -> (i32, i32) {
    %c0_i32 = arith.constant 0 : i32
    %c0_i32_0 = arith.constant 0 : i32
    %c0_i32_1 = arith.constant 0 : i32
    return %c0_i32, %c0_i32_0 : i32, i32
  }
  func.func @transform_6(%arg0: i32) -> (i32, i32) {
    %c0_i32 = arith.constant 0 : i32
    %c0_i32_0 = arith.constant 0 : i32
    %c0_i32_1 = arith.constant 0 : i32
    return %c0_i32, %c0_i32_0 : i32, i32
  }
  func.func @transform_7(%arg0: i32) -> (i32, i32) {
    %c0_i32 = arith.constant 0 : i32
    %c0_i32_0 = arith.constant 0 : i32
    return %arg0, %c0_i32 : i32, i32
  }
}

</mosaic_0001>

<bundles_post_ra>
// kernel: tpu_custom_call.1
= control target key start
LH: loop header
LB: loop body
LE: loop exit
PB: predicated region body
PF: predicated region fallthrough
CT: control target
= control target key end

     0   :  { %vm40_vm0 = vcmask 1041408   ;;  %v444_v0 = vmov 0.0|0.0   ;;  %vm445_vm1 = vmmov 1   ;;  %vm446_vm3 = vmmov 0   ;;  %s597_s1 = inlined_call_operand.vmem [shape: f32[10,128], index: 1, kind: input, shape index: {}]   ;;  %s598_s3 = inlined_call_operand.vmem [shape: f32[128,64], index: 3, kind: input, shape index: {}]   ;;  %s599_s0 = inlined_call_operand.vmem [shape: f32[8,10], index: 0, kind: input, shape index: {}]   ;;  %s600_s5 = inlined_call_operand.vmem [shape: f32[64,4], index: 5, kind: input, shape index: {}]   ;;  %s601_s2 = inlined_call_operand.vmem [shape: f32[1,128], index: 2, kind: input, shape index: {}]   ;;  %s602_s4 = inlined_call_operand.vmem [shape: f32[1,64], index: 4, kind: input, shape index: {}]   ;;  %s603_s6 = inlined_call_operand.vmem [shape: f32[1,4], index: 6, kind: input, shape index: {}]   ;;  %s604_s7 = inlined_call_operand.vmem [shape: f32[8,4], index: 7, kind: output, shape index: {}]  }
   0x1   :  { %400 = vmatprep.subr.bf16.mxu0 %v444_v0  ;;  %v27_v1 = vld [vmem:[%s597_s1] sm:$0xff]  ;;  %v28_v2 = vld [vmem:[%s597_s1 + $0x8] sm:$0x3]  ;;  %vm402_vm2 = vmpackc.low %vm40_vm0, %vm445_vm1  ;;  %404 = vmatprep.subr.bf16.mxu1 %v444_v0  ;;  %v447_v4 = vmov 0.0   ;;  %vm36_vm4 = vcmask 80896   ;;  %vm224_vm5 = vcmask 523264  }
   0x2   :  { %v401_v3 = vpack.c.bf16 %v28_v2, %v27_v1  ;;  %343 = vmatprep.mubr.msk.f32.mxu0 %vm446_vm3, %v447_v4  ;;  %v115_v5 = vld [vmem:[%s598_s3] sm:$0xff]  ;;  %v116_v6 = vld [vmem:[%s598_s3 + $0x8] sm:$0xff]  ;;  %378 = vmatprep.mubr.msk.f32.mxu1 %vm446_vm3, %v447_v4  ;;  %v117_v8 = vld [vmem:[%s598_s3 + $0x10] sm:$0xff]  ;;  %vm298_vm6 = vcmask 31744  }
   0x3   :  { %v405_v7 = vpack.c.bf16 %v116_v6, %v115_v5  ;;  %v118_v9 = vld [vmem:[%s598_s3 + $0x18] sm:$0xff]  ;;  %v26_v10 = vld [vmem:[%s599_s0] sm:$0xff]  ;;  %v120_v13 = vld [vmem:[%s598_s3 + $0x28] sm:$0xff] }
   0x4   :  { %403 = vmatpush3.bf16.msk.msra.mxu0 %vm402_vm2, %v401_v3  ;;  %v408_v11 = vpack.c.bf16 %v118_v9, %v117_v8  ;;  %v119_v12 = vld [vmem:[%s598_s3 + $0x20] sm:$0xff]  ;;  %v121_v15 = vld [vmem:[%s598_s3 + $0x30] sm:$0xff]  ;;  %v122_v16 = vld [vmem:[%s598_s3 + $0x38] sm:$0xff] }
   0x5   :  { %406 = vmatpush3.bf16.msra.mxu1 %v405_v7  ;;  %428 = vmatprep.subr.bf16.mxu0 %v444_v0  ;;  %v411_v14 = vpack.c.bf16 %v120_v13, %v119_v12  ;;  %v414_v17 = vpack.c.bf16 %v122_v16, %v121_v15  ;;  %v123_v18 = vld [vmem:[%s598_s3 + $0x40] sm:$0xff]  ;;  %v124_v19 = vld [vmem:[%s598_s3 + $0x48] sm:$0xff]  ;;  %v125_v21 = vld [vmem:[%s598_s3 + $0x50] sm:$0xff] }
   0x6   :  { %407 = vmatprep.subr.bf16.mxu1 %v444_v0  ;;  %v417_v20 = vpack.c.bf16 %v124_v19, %v123_v18  ;;  %v126_v22 = vld [vmem:[%s598_s3 + $0x58] sm:$0xff]  ;;  %v127_v24 = vld [vmem:[%s598_s3 + $0x60] sm:$0xff]  ;;  %v128_v25 = vld [vmem:[%s598_s3 + $0x68] sm:$0xff] }
   0x7   :  { %344 = vmatmul.mubr.msk.f32.vlgmr.msra.gmra.mrb[0].mxu0 %vm36_vm4, %v26_v10  ;;  %v420_v23 = vpack.c.bf16 %v126_v22, %v125_v21  ;;  %v423_v26 = vpack.c.bf16 %v128_v25, %v127_v24  ;;  %v129_v27 = vld [vmem:[%s598_s3 + $0x70] sm:$0xff]  ;;  %v130_v28 = vld [vmem:[%s598_s3 + $0x78] sm:$0xff]  ;;  %v209_v30 = vld [vmem:[%s600_s5] sm:$0xff] }
   0x8   :  { %397 = vmatprep.mubr.msk.f32.mxu0 %vm446_vm3, %v447_v4  ;;  %v426_v29 = vpack.c.bf16 %v130_v28, %v129_v27  ;;  %v210_v31 = vld [vmem:[%s600_s5 + $0x8] sm:$0xff]  ;;  %v211_v32 = vld [vmem:[%s600_s5 + $0x10] sm:$0xff]  ;;  %v212_v34 = vld [vmem:[%s600_s5 + $0x18] sm:$0xff] }
   0x9   :  { %409 = vmatpush3.bf16.msra.mxu1 %v408_v11  ;;  %v429_v33 = vpack.c.bf16 %v210_v31, %v209_v30  ;;  %v432_v35 = vpack.c.bf16 %v212_v34, %v211_v32  ;;  %v213_v36 = vld [vmem:[%s600_s5 + $0x20] sm:$0xff]  ;;  %v214_v37 = vld [vmem:[%s600_s5 + $0x28] sm:$0xff]  ;;  %v215_v44 = vld [vmem:[%s600_s5 + $0x30] sm:$0xff] }
   0xa   :  { %410 = vmatprep.subr.bf16.mxu1 %v444_v0  ;;  %v435_v38 = vpack.c.bf16 %v214_v37, %v213_v36  ;;  %v304_v39 = vld [vmem:[%s601_s2] ss:$0 sm:$0xff]  ;;  %v216_v45 = vld [vmem:[%s600_s5 + $0x38] sm:$0xff] }
   0xb   :  { %430 = vmatpush3.bf16.msra.mxu0 %v429_v33  ;;  %v438_v46 = vpack.c.bf16 %v216_v45, %v215_v44  ;;  %v307_v47 = vld [vmem:[%s602_s4] ss:$0 sm:$0xff] }
   0xc   :  { %431 = vmatprep.subr.bf16.mxu0 %v444_v0  ;;  %v308_v52 = vld [vmem:[%s603_s6] ss:$0 sm:$0xff] }
   0xd   :  { %412 = vmatpush3.bf16.msra.mxu1 %v411_v14 }
   0xe   :  { %413 = vmatprep.subr.bf16.mxu1 %v444_v0 }
   0xf   :  { %433 = vmatpush3.bf16.msra.mxu0 %v432_v35 }
  0x10   :  { %434 = vmatprep.subr.bf16.mxu0 %v444_v0 }
  0x11   :  { %415 = vmatpush3.bf16.msra.mxu1 %v414_v17 }
  0x12   :  { %416 = vmatprep.subr.bf16.mxu1 %v444_v0 }
  0x13   :  { %436 = vmatpush3.bf16.msra.mxu0 %v435_v38 }
  0x14   :  { %437 = vmatprep.subr.bf16.mxu0 %v444_v0 }
  0x15   :  { %418 = vmatpush3.bf16.msra.mxu1 %v417_v20 }
  0x16   :  { %419 = vmatprep.subr.bf16.mxu1 %v444_v0 }
  0x17   :  { %439 = vmatpush3.bf16.msra.mxu0 %v438_v46 }
  0x19   :  { %421 = vmatpush3.bf16.msra.mxu1 %v420_v23 }
  0x1a   :  { %422 = vmatprep.subr.bf16.mxu1 %v444_v0 }
  0x1d   :  { %424 = vmatpush3.bf16.msra.mxu1 %v423_v26 }
  0x1e   :  { %425 = vmatprep.subr.bf16.mxu1 %v444_v0 }
  0x21   :  { %427 = vmatpush3.bf16.msra.mxu1 %v426_v29 }
  0xda   :  { %v110_v40 = vpop.f32.mrb[0].mxu0 }
  0xdb   :  { %v111_v41 = vadd.f32 %v304_v39, %v110_v40  ;;  %v345_v42 = vpop.f32.mrb[1].mxu0 }
  0xdd   :  { %v114_v43 = vmax.f32 %v111_v41, 0.0 }
  0xdf   :  { %379 = vmatmul.mubr.f32.vlgmr.msra.gmra.mrb[0].mxu1 %v114_v43 }
 0x1b2   :  { %v204_v48 = vpop.f32.mrb[0].mxu1 }
 0x1b3   :  { %v205_v49 = vadd.f32 %v307_v47, %v204_v48  ;;  %v380_v50 = vpop.f32.mrb[1].mxu1 }
 0x1b5   :  { %v208_v51 = vmax.f32 %v205_v49, 0.0 }
 0x1b7   :  { %398 = vmatmul.mubr.msk.f32.vlgmr.msra.gmra.mrb[2].mxu0 %vm224_vm5, %v208_v51 }
 0x28a   :  { %v294_v53 = vpop.f32.mrb[2].mxu0 }
 0x28b   :  { %v295_v54 = vadd.f32 %v308_v52, %v294_v53  ;;  %v399_v55 = vpop.f32.mrb[3].mxu0 }
 0x28d   :  { %299 = vst.msk [vmem:[%s604_s7] sm:$0xff] %vm298_vm6, %v295_v54 }

</bundles_post_ra>
